<compile_context>
chip_gen: v5e
topology: v5e:2x2
jax: 0.10.0
libtpu: 0.0.40
codegen_flags: <defaults>
</compile_context>

<pallas_src>
import math

import jax
import jax.numpy as jnp
from jax.experimental import pallas as pl
from jax.experimental.pallas import tpu as pltpu

_C0 = 0.7978845608028654            # sqrt(2/pi)
_C1 = 0.7978845608028654 * 0.044715  # sqrt(2/pi) * 0.044715


def _gelu_tanh_kernel(x_ref, o_ref):
    # f32 math keeps v5e happy (no bf16 VPU/EUP path) and matches the PyTorch
    # reference tightly; the kernel is HBM-bound so the upcast is hidden.
    x = x_ref[...].astype(jnp.float32)
    inner = x * (_C0 + _C1 * (x * x))     # factored: saves 2 VALU ops / elem
    half_x = 0.5 * x
    o_ref[...] = (half_x + half_x * jnp.tanh(inner)).astype(o_ref.dtype)


def _pick_width(total_128):
    """Largest lane-dense width (multiple of 128) that divides total_128."""
    for w in (1024, 512, 256, 128):
        if total_128 % w == 0:
            return w
    return 128  # unreachable: total_128 is a multiple of 128


def _vmem_capacity_bytes():
    try:
        return int(pltpu.get_tpu_info().vmem_capacity_bytes)
    except Exception:
        return 64 * 1024 * 1024  # conservative default (v7x per-TC VMEM)


def gelu_tanh(x, *, target_block_bytes=None, max_block_rows=None, donate=False):
    """Tanh-approx GELU, semantics of F.gelu(x, approximate='tanh')."""
    orig_shape = x.shape
    total = math.prod(orig_shape) if orig_shape else 1
    if total == 0:
        return x  # empty tensor: nothing to do

    # ---- lane-dense slab layout ---------------------------------------------
    pad = (-total) % 128
    x_flat = x.reshape(total)
    if pad:
        # Small wrapper pad (+ slice after) keeps the kernel's stores unmasked;
        # gelu(0) == 0 so the padding is inert.
        x_flat = jnp.pad(x_flat, (0, pad))
    padded_total = total + pad
    width = _pick_width(padded_total)
    rows = padded_total // width
    x2d = x_flat.reshape(rows, width)

    # ---- block sizing, gated on this generation's VMEM -----------------------
    itemsize = x.dtype.itemsize
    sub = max(8, 32 // itemsize)  # native sublane packing: f32->8, bf16->16
    vmem_cap = _vmem_capacity_bytes()
    if target_block_bytes is None:
        # ~1/16 of VMEM per block -> 2-in + 2-out double buffers ~= 1/4 of VMEM,
        # leaving headroom for f32 intermediates.  v7x(64 MiB)->4 MiB blocks,
        # v5e/v6e(128 MiB)->8 MiB blocks.
        target_block_bytes = min(8 << 20, max(2 << 20, vmem_cap // 16))
    tm = target_block_bytes // max(1, width * itemsize)
    tm = max(sub, (tm // sub) * sub)
    if max_block_rows is not None:  # test hook to force a multi-block grid
        tm = min(tm, max(sub, (max_block_rows // sub) * sub))
    # Guarantee >=2-4 blocks when the tensor spans multiple sublane groups:
    # grid=(1,) would serialize DMA-in -> compute -> DMA-out (no pipelining)
    # and starve the second TensorCore on v7x.
    if rows >= 4 * sub:
        tm = min(tm, ((rows + 4 * sub - 1) // (4 * sub)) * sub)   # ~rows/4
    elif rows >= 2 * sub:
        tm = min(tm, ((rows + 2 * sub - 1) // (2 * sub)) * sub)   # ~rows/2
    if tm > rows:
        tm = rows  # full-extent block is always legal
    grid = (pl.cdiv(rows, tm),)  # OOB tail block is read-padded / write-masked

    # Raise scoped VMEM so the larger blocks fit on every generation
    # (v7x -> 48 MiB of 64 MiB physical, v5e/v6e -> 96 MiB of 128 MiB).
    vmem_limit = max(32 << 20, min((vmem_cap * 3) // 4, 96 << 20))

    out = pl.pallas_call(
        _gelu_tanh_kernel,
        out_shape=jax.ShapeDtypeStruct((rows, width), x.dtype),
        grid_spec=pltpu.PrefetchScalarGridSpec(
            num_scalar_prefetch=0,
            grid=grid,
            in_specs=[pl.BlockSpec((tm, width), lambda i: (i, 0))],
            out_specs=pl.BlockSpec((tm, width), lambda i: (i, 0)),
        ),
        # Opt-in HBM buffer reuse when the caller donates the input.
        input_output_aliases=({0: 0} if donate else {}),
        compiler_params=pltpu.CompilerParams(
            # "parallel" lets v7x shard the row tiles across its 2 TensorCores;
            # no-op on single-TC v5e/v6e.
            dimension_semantics=("parallel",),
            vmem_limit_bytes=vmem_limit,
        ),
    )(x2d)

    out_flat = out.reshape(padded_total)
    if pad:
        out_flat = out_flat[:total]
    return out_flat.reshape(orig_shape)


def gelu_module_forward(x, **args):
    """Mirrors GELU.forward: returns {'x': F.gelu(x, approximate='tanh')}."""
    return {"x": gelu_tanh(x)}


if __name__ == "__main__":
    key = jax.random.PRNGKey(0)
    k1, k2, k3, k4 = jax.random.split(key, 4)

    # 1) Module-shaped input: batch=2, seq=8, hidden=32 (lane-dense slab path).
    x1 = jax.random.normal(k1, (2, 8, 32), dtype=jnp.float32)
    out1 = gelu_module_forward(x1)["x"]
    jax.block_until_ready(out1)
    ref1 = jax.nn.gelu(x1, approximate=True)
    assert out1.shape == x1.shape and out1.dtype == x1.dtype
    assert jnp.max(jnp.abs(out1 - ref1)) < 1e-5

    # 2) Multi-block grid with a masked OOB tail (rows=10, tm forced to 8).
    x2 = jax.random.normal(k2, (4, 10, 256), dtype=jnp.float32)
    out2 = gelu_tanh(x2, max_block_rows=8)
    jax.block_until_ready(out2)
    ref2 = jax.nn.gelu(x2, approximate=True)
    assert jnp.max(jnp.abs(out2 - ref2)) < 1e-5

    # 3) Non-128-multiple total (3*5*33=495): wrapper pad+slice path.
    x3 = jax.random.normal(k3, (3, 5, 33), dtype=jnp.float32)
    out3 = gelu_tanh(x3)
    jax.block_until_ready(out3)
    ref3 = jax.nn.gelu(x3, approximate=True)
    assert out3.shape == x3.shape and out3.dtype == x3.dtype
    assert jnp.max(jnp.abs(out3 - ref3)) < 1e-5

    # 4) bf16 input (f32 math in-kernel, cast back on store).
    x4 = jax.random.normal(k4, (2, 8, 256), dtype=jnp.bfloat16)
    out4 = gelu_tanh(x4)
    jax.block_until_ready(out4)
    ref4 = jax.nn.gelu(x4.astype(jnp.float32), approximate=True)
    assert out4.dtype == jnp.bfloat16
    assert jnp.max(jnp.abs(out4.astype(jnp.float32) - ref4)) < 2e-2

    print("KERNEL_OK")
</pallas_src>

<mosaic_0001>
module attributes {stable_mosaic.version = 11 : i64} {
  func.func @_gelu_tanh_kernel(%arg0: i32, %arg1: memref<1x512xf32, #tpu.memory_space<vmem>>, %arg2: memref<1x512xf32, #tpu.memory_space<vmem>>) attributes {dimension_semantics = [#tpu.dimension_semantics<parallel>], iteration_bounds = array<i64: 1>, scalar_prefetch = 0 : i64, scratch_operands = 0 : i64, tpu.core_type = #tpu.core_type<tc>, window_params = [{transform_indices = @transform_0, window_bounds = array<i64: 1, 512>}, {transform_indices = @transform_1, window_bounds = array<i64: 1, 512>}]} {
    %c0 = arith.constant 0 : index
    %c0_0 = arith.constant 0 : index
    %0 = vector.load %arg1[%c0, %c0_0] : memref<1x512xf32, #tpu.memory_space<vmem>>, vector<1x512xf32>
    %1 = arith.mulf %0, %0 : vector<1x512xf32>
    %cst = arith.constant 0.0356774069 : f32
    %2 = vector.broadcast %cst : f32 to vector<1x512xf32>
    %3 = arith.mulf %2, %1 : vector<1x512xf32>
    %cst_1 = arith.constant 0.797884583 : f32
    %4 = vector.broadcast %cst_1 : f32 to vector<1x512xf32>
    %5 = arith.addf %4, %3 : vector<1x512xf32>
    %6 = arith.mulf %0, %5 : vector<1x512xf32>
    %cst_2 = arith.constant 5.000000e-01 : f32
    %7 = vector.broadcast %cst_2 : f32 to vector<1x512xf32>
    %8 = arith.mulf %7, %0 : vector<1x512xf32>
    %9 = math.tanh %6 : vector<1x512xf32>
    %10 = arith.mulf %8, %9 : vector<1x512xf32>
    %11 = arith.addf %8, %10 : vector<1x512xf32>
    %c0_3 = arith.constant 0 : index
    %c0_4 = arith.constant 0 : index
    %12 = vector.load %arg2[%c0_3, %c0_4] : memref<1x512xf32, #tpu.memory_space<vmem>>, vector<1x512xf32>
    tpu.vector_store %arg2[%c0_3, %c0_4], %11 {strides = array<i32>} : memref<1x512xf32, #tpu.memory_space<vmem>>, vector<1x512xf32>,
    return
  }
  func.func @transform_0(%arg0: i32) -> (i32, i32) {
    %c0_i32 = arith.constant 0 : i32
    %c0_i32_0 = arith.constant 0 : i32
    return %arg0, %c0_i32 : i32, i32
  }
  func.func @transform_1(%arg0: i32) -> (i32, i32) {
    %c0_i32 = arith.constant 0 : i32
    %c0_i32_0 = arith.constant 0 : i32
    return %arg0, %c0_i32 : i32, i32
  }
}

</mosaic_0001>

<bundles_post_ra>
// kernel: tpu_custom_call.1
= control target key start
LH: loop header
LB: loop body
LE: loop exit
PB: predicated region body
PF: predicated region fallthrough
CT: control target
= control target key end

     0   :  { %6 = vsyncpa [#allocation3], 0  ;;  %s128_s0 = inlined_call_operand.hbm [shape: f32[1,512], index: 0, kind: input, shape index: {}]   ;;  %s129_s1 = inlined_call_operand.hbm [shape: f32[1,512], index: 1, kind: output, shape index: {}]  }
   0x1   :  { %7 = vsyncpa [#allocation4], 0  ;;  %s13_s8 = sshll.u32 %s128_s0, 4  ;;  %s110_s9 = smov [#allocation2]   ;;  %s14_s8 = int_to_ptr.hbm [resolvable:$true] %s13_s8 }
   0x2   :  { %s15_s10 = sshll.u32 %s110_s9, 4  ;;  %s16_s10 = int_to_ptr.vmem [resolvable:$true] %s15_s10 }
   0x3   :  { %18 = dma.hbm_to_vmem [thread:$0]  %s14_s8, 64, %s16_s10, [#allocation3]  }
   0x4   :  { %106 = dma.done.wait [#allocation3], 64  }
   0x5   :  { %107 = vsyncadd [#allocation3], 4294967232  ;;  %v23_v0 = vld [vmem:[#allocation2] sm:$0xf]  ;;  %v32_v6 = vlaneseq  ;;  %s111_s11 = smov [#allocation5]   ;;  %s44_s14 = sshll.u32 %s129_s1, 4  ;;  %s45_s14 = int_to_ptr.hbm [resolvable:$true] %s44_s14 }
   0x6   :  { %v24_v1 = vmul.f32 %v23_v0, %v23_v0  ;;  %v28_v5 = vmul.f32 0.5, %v23_v0  ;;  %s42_s12 = sshll.u32 %s111_s11, 4  ;;  %s43_s12 = int_to_ptr.vmem [resolvable:$true] %s42_s12 }
   0x7   :  { %vm34_vm0 = vcmp.lt.s32.totalorder %v32_v6, 512 }
   0x8   :  { %v25_v2 = vmul.f32 0.035677407, %v24_v1 }
   0xa   :  { %v26_v3 = vadd.f32 0.7978846, %v25_v2 }
   0xc   :  { %v27_v4 = vmul.f32 %v26_v3, %v23_v0 }
   0xe   :  { %56 = vtanh.f32 %v27_v4 }
  0x14   :  { %v57_v7 = vpop.eup %56 }
  0x15   :  { %v30_v8 = vmul.f32 %v57_v7, %v28_v5 }
  0x17   :  { %v31_v9 = vadd.f32 %v30_v8, %v28_v5 }
  0x19   :  { %36 = vst.msk [vmem:[#allocation5] sm:$0xf] %vm34_vm0, %v31_v9 }
  0x1a   :  { %47 = dma.vmem_to_hbm [thread:$0]  %s43_s12, 64, %s45_s14, [#allocation4]  }
  0x1b   :  { %108 = dma.done.wait [#allocation4], 64  }
  0x1c   :  { %109 = vsyncadd [#allocation4], 4294967232 }
  0x1d   :  { %52 = vsyncpa [#allocation3], 1 }
  0x1e   :  { %53 = vsyncpa [#allocation4], 1 }

</bundles_post_ra>
